<compile_context>
chip_gen: v5e
topology: v5e:2x2
jax: 0.10.0
libtpu: 0.0.40
codegen_flags: <defaults>
</compile_context>

<pallas_src>
import jax
import jax.numpy as jnp
from jax.experimental import pallas as pl
from jax.experimental.pallas import tpu as pltpu


def _h_swish_kernel(x_ref, o_ref):
    x = x_ref[...]
    xf = x.astype(jnp.float32)
    # h_sigmoid(x) = relu6(x + 3) / 6 ; h_swish(x) = x * h_sigmoid(x)
    hs = jnp.clip(xf + 3.0, 0.0, 6.0) * (1.0 / 6.0)
    o_ref[...] = (xf * hs).astype(o_ref.dtype)


def _h_swish_xla(x):
    """Plain-XLA fallback for tiny tails (< 128 elements)."""
    xf = x.astype(jnp.float32)
    return (xf * (jnp.clip(xf + 3.0, 0.0, 6.0) * (1.0 / 6.0))).astype(x.dtype)


def _h_swish_2d(x2d: jax.Array, block_bytes: int) -> jax.Array:
    """Run the Pallas kernel on a lane-dense 2D slab (rows, width)."""
    rows, width = x2d.shape
    dtype = x2d.dtype
    itemsize = jnp.dtype(dtype).itemsize

    # Rows per block so that one block is ~block_bytes, rounded to multiple of 8.
    target_rows = max(8, (block_bytes // (width * itemsize)) // 8 * 8)
    if rows <= target_rows:
        block_rows = rows          # full extent along rows -> always legal
    else:
        block_rows = target_rows   # multiple of 8; ragged last block is masked

    grid = (pl.cdiv(rows, block_rows),)

    return pl.pallas_call(
        _h_swish_kernel,
        out_shape=jax.ShapeDtypeStruct((rows, width), dtype),
        grid_spec=pltpu.PrefetchScalarGridSpec(
            num_scalar_prefetch=0,
            grid=grid,
            in_specs=[pl.BlockSpec((block_rows, width), lambda i: (i, 0))],
            out_specs=pl.BlockSpec((block_rows, width), lambda i: (i, 0)),
        ),
        compiler_params=pltpu.CompilerParams(
            dimension_semantics=("parallel",),
        ),
    )(x2d)


def h_swish(x: jax.Array, *, block_bytes: int = 2 * 1024 * 1024) -> jax.Array:
    """Elementwise h_swish matching the PyTorch module semantics (any shape)."""
    orig_shape = x.shape
    total = x.size
    if total == 0:
        return x

    x_flat = jnp.ravel(x)

    # Widest lane-dense width (multiple of 128) that divides the flat length.
    width = None
    for w in (4096, 2048, 1024, 512, 256, 128):
        if total % w == 0:
            width = w
            break

    if width is not None:
        # Common fast path: pure reshape, no padding / extra HBM passes.
        out2d = _h_swish_2d(x_flat.reshape(total // width, width), block_bytes)
        return out2d.reshape(orig_shape)

    # Rare path: flat length not a multiple of 128. Run the kernel on the
    # divisible prefix and handle the (< 128-elem) tail in plain XLA.
    main = (total // 128) * 128
    if main == 0:
        return _h_swish_xla(x_flat).reshape(orig_shape)
    head = _h_swish_2d(x_flat[:main].reshape(main // 128, 128), block_bytes)
    tail = _h_swish_xla(x_flat[main:])
    return jnp.concatenate([head.reshape(-1), tail]).reshape(orig_shape)


def _h_swish_ref(x):
    return x * (jnp.clip(x + 3.0, 0.0, 6.0) / 6.0)


if __name__ == "__main__":
    key = jax.random.PRNGKey(0)

    # NCHW input, as the PyTorch module expects.
    x = jax.random.normal(key, (2, 4, 16, 16), dtype=jnp.float32) * 4.0
    out = jax.block_until_ready(h_swish(x))
    ref = _h_swish_ref(x)
    assert out.shape == x.shape and out.dtype == x.dtype
    assert jnp.max(jnp.abs(out - ref)) < 1e-5

    # Extra check: awkward flat length (exercises the prefix+tail path).
    x2 = jax.random.normal(jax.random.PRNGKey(1), (2, 3, 200), dtype=jnp.float32) * 4.0
    out2 = jax.block_until_ready(h_swish(x2))
    assert jnp.max(jnp.abs(out2 - _h_swish_ref(x2))) < 1e-5

    # Extra check: tiny tensor (< 128 elements -> pure XLA fallback).
    x3 = jax.random.normal(jax.random.PRNGKey(2), (3, 5, 7), dtype=jnp.float32) * 4.0
    out3 = jax.block_until_ready(h_swish(x3))
    assert jnp.max(jnp.abs(out3 - _h_swish_ref(x3))) < 1e-5

    print("KERNEL_OK")
</pallas_src>

<mosaic_0001>
module attributes {stable_mosaic.version = 11 : i64} {
  func.func @_h_swish_kernel(%arg0: i32, %arg1: memref<1x2048xf32, #tpu.memory_space<vmem>>, %arg2: memref<1x2048xf32, #tpu.memory_space<vmem>>) attributes {dimension_semantics = [#tpu.dimension_semantics<parallel>], iteration_bounds = array<i64: 1>, scalar_prefetch = 0 : i64, scratch_operands = 0 : i64, tpu.core_type = #tpu.core_type<tc>, window_params = [{transform_indices = @transform_0, window_bounds = array<i64: 1, 2048>}, {transform_indices = @transform_1, window_bounds = array<i64: 1, 2048>}]} {
    %c0 = arith.constant 0 : index
    %c0_0 = arith.constant 0 : index
    %0 = vector.load %arg1[%c0, %c0_0] : memref<1x2048xf32, #tpu.memory_space<vmem>>, vector<1x2048xf32>
    %cst = arith.constant 3.000000e+00 : f32
    %1 = vector.broadcast %cst : f32 to vector<1x2048xf32>
    %2 = arith.addf %0, %1 : vector<1x2048xf32>
    %cst_1 = arith.constant 0.000000e+00 : f32
    %cst_2 = arith.constant 6.000000e+00 : f32
    %3 = vector.broadcast %cst_1 : f32 to vector<1x2048xf32>
    %4 = arith.maximumf %3, %2 : vector<1x2048xf32>
    %5 = vector.broadcast %cst_2 : f32 to vector<1x2048xf32>
    %6 = arith.minimumf %5, %4 : vector<1x2048xf32>
    %cst_3 = arith.constant 0.166666672 : f32
    %7 = vector.broadcast %cst_3 : f32 to vector<1x2048xf32>
    %8 = arith.mulf %6, %7 : vector<1x2048xf32>
    %9 = arith.mulf %0, %8 : vector<1x2048xf32>
    %c0_4 = arith.constant 0 : index
    %c0_5 = arith.constant 0 : index
    %10 = vector.load %arg2[%c0_4, %c0_5] : memref<1x2048xf32, #tpu.memory_space<vmem>>, vector<1x2048xf32>
    tpu.vector_store %arg2[%c0_4, %c0_5], %9 {strides = array<i32>} : memref<1x2048xf32, #tpu.memory_space<vmem>>, vector<1x2048xf32>,
    return
  }
  func.func @transform_0(%arg0: i32) -> (i32, i32) {
    %c0_i32 = arith.constant 0 : i32
    %c0_i32_0 = arith.constant 0 : i32
    return %arg0, %c0_i32 : i32, i32
  }
  func.func @transform_1(%arg0: i32) -> (i32, i32) {
    %c0_i32 = arith.constant 0 : i32
    %c0_i32_0 = arith.constant 0 : i32
    return %arg0, %c0_i32 : i32, i32
  }
}

</mosaic_0001>

<bundles_post_ra>
// kernel: tpu_custom_call.1
= control target key start
LH: loop header
LB: loop body
LE: loop exit
PB: predicated region body
PF: predicated region fallthrough
CT: control target
= control target key end

     0   :  { %6 = vsyncpa [#allocation3], 0  ;;  %s126_s0 = inlined_call_operand.hbm [shape: f32[1,2048], index: 0, kind: input, shape index: {}]   ;;  %s127_s1 = inlined_call_operand.hbm [shape: f32[1,2048], index: 1, kind: output, shape index: {}]  }
   0x1   :  { %7 = vsyncpa [#allocation4], 0  ;;  %s13_s8 = sshll.u32 %s126_s0, 4  ;;  %s108_s9 = smov [#allocation2]   ;;  %s14_s8 = int_to_ptr.hbm [resolvable:$true] %s13_s8 }
   0x2   :  { %s15_s10 = sshll.u32 %s108_s9, 4  ;;  %s16_s10 = int_to_ptr.vmem [resolvable:$true] %s15_s10 }
   0x3   :  { %18 = dma.hbm_to_vmem [thread:$0]  %s14_s8, 256, %s16_s10, [#allocation3]  }
   0x4   :  { %104 = dma.done.wait [#allocation3], 256  }
   0x5   :  { %105 = vsyncadd [#allocation3], 4294967040  ;;  %v23_v0 = vld [vmem:[#allocation2] sm:$0xff]  ;;  %v24_v1 = vld [vmem:[#allocation2 + $0x8] sm:$0xff]  ;;  %s109_s11 = smov [#allocation5]   ;;  %s44_s14 = sshll.u32 %s127_s1, 4  ;;  %s45_s14 = int_to_ptr.hbm [resolvable:$true] %s44_s14 }
   0x6   :  { %v25_v2 = vadd.f32 3.0, %v23_v0  ;;  %v26_v3 = vadd.f32 3.0, %v24_v1  ;;  %s42_s12 = sshll.u32 %s109_s11, 4  ;;  %s43_s12 = int_to_ptr.vmem [resolvable:$true] %s42_s12 }
   0x8   :  { %v27_v4 = vmax.f32 %v25_v2, 0.0  ;;  %v28_v5 = vmax.f32 %v26_v3, 0.0 }
   0xa   :  { %v29_v6 = vmin.f32 %v27_v4, 6.0  ;;  %v30_v7 = vmin.f32 %v28_v5, 6.0 }
   0xc   :  { %v31_v8 = vmul.f32 0.16666667, %v29_v6  ;;  %v32_v9 = vmul.f32 0.16666667, %v30_v7 }
   0xe   :  { %v33_v10 = vmul.f32 %v31_v8, %v23_v0  ;;  %v34_v11 = vmul.f32 %v32_v9, %v24_v1 }
  0x10   :  { %35 = vst [vmem:[#allocation5] sm:$0xff] %v33_v10 }
  0x11   :  { %36 = vst [vmem:[#allocation5 + $0x8] sm:$0xff] %v34_v11 }
  0x12   :  { %47 = dma.vmem_to_hbm [thread:$0]  %s43_s12, 256, %s45_s14, [#allocation4]  }
  0x13   :  { %106 = dma.done.wait [#allocation4], 256  }
  0x14   :  { %107 = vsyncadd [#allocation4], 4294967040 }
  0x15   :  { %52 = vsyncpa [#allocation3], 1 }
  0x16   :  { %53 = vsyncpa [#allocation4], 1 }

</bundles_post_ra>
